<compile_context>
chip_gen: v7x
topology: tpu7x:2x2x1
jax: 0.10.0
libtpu: 0.0.40
codegen_flags: <defaults>
</compile_context>

<pallas_src>
import functools

import jax
import jax.numpy as jnp
from jax import lax
from jax.experimental import pallas as pl
from jax.experimental.pallas import tpu as pltpu

_BIG = 1e30  # score bias for zero-padded codebook rows (never selected by argmin)


def _round_up(x, m):
    return (x + m - 1) // m * m


def _vq_kernel(x_ref, w_ref, wt_ref, hws_ref, quant_ref, stats_ref, *, k_pad, bf16_score):
    # x_ref: (C, TILE_L) NCL block -- lanes are flattened rows, sublanes are embedding dims.
    x = x_ref[...].astype(jnp.float32)           # (C, TILE_L)
    w = w_ref[...]                               # (K_pad, C)  f32, VMEM-resident
    w_t = wt_ref[...]                            # (C, K_pad)  f32, VMEM-resident
    hws = hws_ref[...]                           # (K_pad, 1): 0.5*sum(W,axis=1), pads = +_BIG

    # argmin_k over the codebook; per-row constants dropped: score = 0.5*sum(W) - W @ x.
    if bf16_score:
        wx = lax.dot_general(w.astype(jnp.bfloat16), x.astype(jnp.bfloat16),
                             (((1,), (0,)), ((), ())),
                             preferred_element_type=jnp.float32)        # (K_pad, TILE_L)
    else:
        wx = lax.dot_general(w, x, (((1,), (0,)), ((), ())),
                             preferred_element_type=jnp.float32)        # MXU, (K_pad, TILE_L)
    score = hws - wx                                                    # (K_pad, TILE_L)

    # argmin over the codebook axis (sublanes), first-index tie-break like torch.argmin.
    k_iota = lax.broadcasted_iota(jnp.int32, score.shape, 0)
    s_min = jnp.min(score, axis=0, keepdims=True)                       # (1, TILE_L)
    idx = jnp.min(jnp.where(score == s_min, k_iota, k_pad), axis=0, keepdims=True)
    enc = (k_iota == idx).astype(jnp.float32)                           # (K_pad, TILE_L) one-hot

    # quantizer directly in NCL layout: quant[c, l] = W[idx[l], c]  (W^T @ one_hot on the MXU;
    # padded codebook rows have enc == 0 so they never contribute).
    quant = lax.dot_general(w_t, enc, (((1,), (0,)), ((), ())),
                            preferred_element_type=jnp.float32)         # (C, TILE_L)
    quant_ref[...] = quant.astype(quant_ref.dtype)

    # Per-tile partials packed into one lane-dense (2, K_pad) slab:
    #   row 0: one-hot column counts, row 1: sum of squared error (broadcast across lanes).
    ones_row = jnp.ones((1, x.shape[1]), jnp.float32)
    counts = lax.dot_general(ones_row, enc, (((1,), (1,)), ((), ())),
                             preferred_element_type=jnp.float32)        # (1, K_pad)
    diff = x - quant
    lpart = jnp.sum(jnp.sum(diff * diff, axis=1, keepdims=True),
                    axis=0, keepdims=True)                              # (1, 1)
    stats_ref[0:1, :] = counts
    stats_ref[1:2, :] = jnp.broadcast_to(lpart, (1, k_pad))


def _pick_tile_l(L, C, k_pad, vmem_budget_bytes):
    """Largest lane-aligned divisor of L whose live set fits the VMEM budget."""
    cands = [t for t in (2048, 1024, 512, 256, 128) if L % t == 0] + [L]
    for t in cands:
        est = 4 * (4 * C * t          # x + quant tiles, double-buffered
                   + 4 * k_pad * C    # W and W^T, double-buffered by the pipeline
                   + 3 * k_pad * t    # score / iota / one-hot intermediates
                   + 2 * C * t)       # diff + headroom
        if est <= vmem_budget_bytes:
            return t
    return cands[-1]


def vector_quantizer_forward(x_ncl, weight, beta, *, bf16_score=False):
    """x_ncl: (B, C, L) activation (PyTorch NCL layout), weight: (K, C) codebook."""
    B, C, L = x_ncl.shape
    K, C2 = weight.shape
    assert C == C2
    assert L == C, "reference module only runs when seq length == embedding_dim"

    K_PAD = _round_up(K, 128)

    # Generation-aware VMEM budget (v5e/v6e: 128 MiB, v7x: 64 MiB physical).
    try:
        vmem_cap = int(pltpu.get_tpu_info().vmem_capacity_bytes)
    except Exception:  # pragma: no cover - conservative fallback
        vmem_cap = 64 * 1024 * 1024
    vmem_limit = max(32 * 1024 * 1024, min(vmem_cap // 2, 96 * 1024 * 1024))

    TILE_L = _pick_tile_l(L, C, K_PAD, (vmem_limit * 3) // 5)
    JL = L // TILE_L

    w32 = weight.astype(jnp.float32)
    w_pad = jnp.pad(w32, ((0, K_PAD - K), (0, 0)))          # (K_PAD, C), tiny one-time copy
    w_t = jnp.transpose(w_pad)                               # (C, K_PAD)
    # Hoisted once: 0.5 * sum(W, axis=1)  (reference uses sum, NOT sum of squares); padded
    # codebook rows get a huge bias so the argmin never selects them.
    hws = jnp.pad(0.5 * jnp.sum(w32, axis=1), (0, K_PAD - K), constant_values=_BIG)
    hws = hws.reshape(K_PAD, 1)

    kernel = functools.partial(_vq_kernel, k_pad=K_PAD, bf16_score=bf16_score)

    grid_spec = pltpu.PrefetchScalarGridSpec(
        num_scalar_prefetch=0,
        grid=(B, JL),
        in_specs=[
            pl.BlockSpec((None, C, TILE_L), lambda b, j: (b, 0, j)),   # NCL activation block
            pl.BlockSpec((K_PAD, C), lambda b, j: (0, 0)),             # codebook W: resident
            pl.BlockSpec((C, K_PAD), lambda b, j: (0, 0)),             # codebook W^T: resident
            pl.BlockSpec((K_PAD, 1), lambda b, j: (0, 0)),             # 0.5*sum(W): resident
        ],
        out_specs=(
            pl.BlockSpec((None, C, TILE_L), lambda b, j: (b, 0, j)),   # quantized, NCL layout
            pl.BlockSpec((None, 2, K_PAD), lambda b, j: (b * JL + j, 0, 0)),  # per-tile stats
        ),
    )

    quant_ncl, stats = pl.pallas_call(
        kernel,
        grid_spec=grid_spec,
        out_shape=(
            jax.ShapeDtypeStruct((B, C, L), x_ncl.dtype),
            jax.ShapeDtypeStruct((B * JL, 2, K_PAD), jnp.float32),
        ),
        compiler_params=pltpu.CompilerParams(
            dimension_semantics=("parallel", "parallel"),  # no cross-step carry -> megacore
            vmem_limit_bytes=vmem_limit,
        ),
    )(x_ncl, w_pad, w_t, hws)

    # Finalize tiny reductions once in the wrapper (scalar/EUP tail).
    N = B * L
    counts = jnp.sum(stats[:, 0, :], axis=0)                  # (K_PAD,), padded lanes are 0
    total_sq = jnp.sum(stats[:, 1, 0])                        # sum of per-tile squared errors
    loss = (1.0 + float(beta)) * total_sq / float(N * C)
    avg_probs = counts / float(N)
    perplexity = jnp.exp(-jnp.sum(avg_probs * jnp.log(avg_probs + 1e-10)))
    return loss, quant_ncl, perplexity


if __name__ == "__main__":
    # Small shapes consistent with the module: embedding_dim=16, seq len L=16 (must equal C),
    # num_embedding=32, beta=0.25, batch=2.
    B, C, L = 2, 16, 16
    K = 32
    beta = 0.25

    key = jax.random.PRNGKey(0)
    kx, kw = jax.random.split(key)
    x = jax.random.normal(kx, (B, C, L), dtype=jnp.float32)
    # nn.Embedding weight init: uniform(-1/K, 1/K), deterministic here.
    weight = jax.random.uniform(kw, (K, C), dtype=jnp.float32,
                                minval=-1.0 / K, maxval=1.0 / K)

    loss, quantized, perplexity = jax.block_until_ready(
        vector_quantizer_forward(x, weight, beta))

    # pure-JAX reference of the same (flat) math
    flat = jnp.transpose(x, (0, 2, 1)).reshape(B * L, C)
    dist = (jnp.sum(flat * flat, axis=1, keepdims=True) + jnp.sum(weight, axis=1)
            - 2.0 * jnp.dot(flat, weight.T, precision=lax.Precision.HIGHEST))
    enc = jax.nn.one_hot(jnp.argmin(dist, axis=1), K, dtype=jnp.float32)
    quant_ref = jnp.dot(enc, weight, precision=lax.Precision.HIGHEST)
    loss_ref = (1.0 + beta) * jnp.mean((flat - quant_ref) ** 2)
    avg_ref = jnp.mean(enc, axis=0)
    perp_ref = jnp.exp(-jnp.sum(avg_ref * jnp.log(avg_ref + 1e-10)))
    quant_ncl_ref = quant_ref.reshape(B, L, C).transpose(0, 2, 1)

    assert quantized.shape == (B, C, L)
    assert bool(jnp.all(jnp.isfinite(quantized)))
    assert bool(jnp.allclose(loss, loss_ref, rtol=1e-3, atol=1e-5)), (loss, loss_ref)
    assert bool(jnp.allclose(perplexity, perp_ref, rtol=1e-3, atol=1e-5)), (perplexity, perp_ref)
    assert bool(jnp.allclose(quantized, quant_ncl_ref, rtol=1e-3, atol=1e-4))
    print("KERNEL_OK")
</pallas_src>

<mosaic_0001>
module attributes {stable_mosaic.version = 11 : i64} {
  func.func @_vq_kernel(%arg0: i32, %arg1: i32, %arg2: memref<1x16x16xf32, #tpu.memory_space<vmem>>, %arg3: memref<128x16xf32, #tpu.memory_space<vmem>>, %arg4: memref<16x128xf32, #tpu.memory_space<vmem>>, %arg5: memref<128x1xf32, #tpu.memory_space<vmem>>, %arg6: memref<1x16x16xf32, #tpu.memory_space<vmem>>, %arg7: memref<1x2x128xf32, #tpu.memory_space<vmem>>) attributes {dimension_semantics = [#tpu.dimension_semantics<parallel>, #tpu.dimension_semantics<parallel>], iteration_bounds = array<i64: 2, 1>, scalar_prefetch = 0 : i64, scratch_operands = 0 : i64, tpu.core_type = #tpu.core_type<tc>, window_params = [{transform_indices = @transform_0, window_bounds = array<i64: 1, 16, 16>}, {pipeline_mode = #tpu.pipeline_mode<synchronous>, transform_indices = @transform_1, window_bounds = array<i64: 128, 16>}, {pipeline_mode = #tpu.pipeline_mode<synchronous>, transform_indices = @transform_2, window_bounds = array<i64: 16, 128>}, {pipeline_mode = #tpu.pipeline_mode<synchronous>, transform_indices = @transform_3, window_bounds = array<i64: 128, 1>}, {transform_indices = @transform_4, window_bounds = array<i64: 1, 16, 16>}, {transform_indices = @transform_5, window_bounds = array<i64: 1, 2, 128>}]} {
    %c0 = arith.constant 0 : index
    %c0_0 = arith.constant 0 : index
    %c0_1 = arith.constant 0 : index
    %0 = vector.load %arg2[%c0, %c0_0, %c0_1] : memref<1x16x16xf32, #tpu.memory_space<vmem>>, vector<1x16x16xf32>
    %1 = vector.shape_cast %0 : vector<1x16x16xf32> to vector<16x16xf32>
    %c0_2 = arith.constant 0 : index
    %c0_3 = arith.constant 0 : index
    %2 = vector.load %arg3[%c0_2, %c0_3] : memref<128x16xf32, #tpu.memory_space<vmem>>, vector<128x16xf32>
    %c0_4 = arith.constant 0 : index
    %c0_5 = arith.constant 0 : index
    %3 = vector.load %arg4[%c0_4, %c0_5] : memref<16x128xf32, #tpu.memory_space<vmem>>, vector<16x128xf32>
    %c0_6 = arith.constant 0 : index
    %c0_7 = arith.constant 0 : index
    %4 = vector.load %arg5[%c0_6, %c0_7] : memref<128x1xf32, #tpu.memory_space<vmem>>, vector<128x1xf32>
    %cst = arith.constant dense<0.000000e+00> : vector<128x16xf32>
    %5 = tpu.matmul %2, %1, %cst {dimension_numbers = #tpu.dot_dimension_numbers<[1], [0], [0], [1], [0, 0, 1, 1], [], []>} : vector<128x16xf32>, vector<16x16xf32>, vector<128x16xf32> -> vector<128x16xf32>
    %6 = vector.broadcast %4 : vector<128x1xf32> to vector<128x16xf32>
    %7 = arith.subf %6, %5 : vector<128x16xf32>
    %8 = tpu.iota {dimensions = array<i32: 0>} : vector<128x16xi32>
    %cst_8 = arith.constant dense<0x7F800000> : vector<16xf32>
    %9 = vector.multi_reduction <minimumf>, %7, %cst_8 [0] : vector<128x16xf32> to vector<16xf32>
    %10 = vector.shape_cast %9 : vector<16xf32> to vector<1x16xf32>
    %11 = vector.broadcast %10 : vector<1x16xf32> to vector<128x16xf32>
    %12 = arith.cmpf oeq, %7, %11 : vector<128x16xf32>
    %c128_i32 = arith.constant 128 : i32
    %13 = vector.broadcast %c128_i32 : i32 to vector<128x16xi32>
    %14 = arith.select %12, %8, %13 : vector<128x16xi1>, vector<128x16xi32>
    %cst_9 = arith.constant dense<2147483647> : vector<16xi32>
    %15 = vector.multi_reduction <minsi>, %14, %cst_9 [0] : vector<128x16xi32> to vector<16xi32>
    %16 = vector.shape_cast %15 : vector<16xi32> to vector<1x16xi32>
    %17 = vector.broadcast %16 : vector<1x16xi32> to vector<128x16xi32>
    %18 = arith.cmpi eq, %8, %17 : vector<128x16xi32>
    %19 = arith.extui %18 : vector<128x16xi1> to vector<128x16xi32>
    %20 = arith.sitofp %19 : vector<128x16xi32> to vector<128x16xf32>
    %cst_10 = arith.constant dense<0.000000e+00> : vector<16x16xf32>
    %21 = tpu.matmul %3, %20, %cst_10 {dimension_numbers = #tpu.dot_dimension_numbers<[1], [0], [0], [1], [0, 0, 1, 1], [], []>} : vector<16x128xf32>, vector<128x16xf32>, vector<16x16xf32> -> vector<16x16xf32>
    %c0_11 = arith.constant 0 : index
    %c0_12 = arith.constant 0 : index
    %c0_13 = arith.constant 0 : index
    %22 = vector.load %arg6[%c0_11, %c0_12, %c0_13] : memref<1x16x16xf32, #tpu.memory_space<vmem>>, vector<1x16x16xf32>
    %23 = vector.shape_cast %22 : vector<1x16x16xf32> to vector<16x16xf32>
    %24 = vector.shape_cast %21 : vector<16x16xf32> to vector<1x16x16xf32>
    tpu.vector_store %arg6[%c0_11, %c0_12, %c0_13], %24 {strides = array<i32>} : memref<1x16x16xf32, #tpu.memory_space<vmem>>, vector<1x16x16xf32>,
    %cst_14 = arith.constant 1.000000e+00 : f32
    %25 = vector.broadcast %cst_14 : f32 to vector<1x16xf32>
    %cst_15 = arith.constant dense<0.000000e+00> : vector<1x128xf32>
    %26 = tpu.matmul %25, %20, %cst_15 {dimension_numbers = #tpu.dot_dimension_numbers<[1], [1], [0], [0], [0, 0, 1, 0], [], []>} : vector<1x16xf32>, vector<128x16xf32>, vector<1x128xf32> -> vector<1x128xf32>
    %27 = arith.subf %1, %21 : vector<16x16xf32>
    %28 = arith.mulf %27, %27 : vector<16x16xf32>
    %cst_16 = arith.constant dense<0.000000e+00> : vector<16xf32>
    %29 = vector.multi_reduction <add>, %28, %cst_16 [1] : vector<16x16xf32> to vector<16xf32>
    %30 = vector.shape_cast %29 : vector<16xf32> to vector<16x1xf32>
    %cst_17 = arith.constant dense<0.000000e+00> : vector<1xf32>
    %31 = vector.multi_reduction <add>, %30, %cst_17 [0] : vector<16x1xf32> to vector<1xf32>
    %32 = vector.shape_cast %31 : vector<1xf32> to vector<1x1xf32>
    %c0_18 = arith.constant 0 : index
    %c0_19 = arith.constant 0 : index
    %c0_20 = arith.constant 0 : index
    %33 = vector.load %arg7[%c0_18, %c0_19, %c0_20] : memref<1x2x128xf32, #tpu.memory_space<vmem>>, vector<1x1x128xf32>
    %34 = vector.shape_cast %33 : vector<1x1x128xf32> to vector<1x128xf32>
    %35 = vector.shape_cast %26 : vector<1x128xf32> to vector<1x1x128xf32>
    tpu.vector_store %arg7[%c0_18, %c0_19, %c0_20], %35 {strides = array<i32>} : memref<1x2x128xf32, #tpu.memory_space<vmem>>, vector<1x1x128xf32>,
    %36 = vector.shape_cast %32 : vector<1x1xf32> to vector<1x1xf32>
    %37 = vector.broadcast %36 : vector<1x1xf32> to vector<1x128xf32>
    %c0_21 = arith.constant 0 : index
    %c1 = arith.constant 1 : index
    %c0_22 = arith.constant 0 : index
    %38 = vector.load %arg7[%c0_21, %c1, %c0_22] : memref<1x2x128xf32, #tpu.memory_space<vmem>>, vector<1x1x128xf32>
    %39 = vector.shape_cast %38 : vector<1x1x128xf32> to vector<1x128xf32>
    %40 = vector.shape_cast %37 : vector<1x128xf32> to vector<1x1x128xf32>
    tpu.vector_store %arg7[%c0_21, %c1, %c0_22], %40 {strides = array<i32>} : memref<1x2x128xf32, #tpu.memory_space<vmem>>, vector<1x1x128xf32>,
    return
  }
  func.func @transform_0(%arg0: i32, %arg1: i32) -> (i32, i32, i32) {
    %c0_i32 = arith.constant 0 : i32
    %c0_i32_0 = arith.constant 0 : i32
    return %arg0, %c0_i32, %arg1 : i32, i32, i32
  }
  func.func @transform_1(%arg0: i32, %arg1: i32) -> (i32, i32) {
    %c0_i32 = arith.constant 0 : i32
    %c0_i32_0 = arith.constant 0 : i32
    %c0_i32_1 = arith.constant 0 : i32
    return %c0_i32, %c0_i32_0 : i32, i32
  }
  func.func @transform_2(%arg0: i32, %arg1: i32) -> (i32, i32) {
    %c0_i32 = arith.constant 0 : i32
    %c0_i32_0 = arith.constant 0 : i32
    %c0_i32_1 = arith.constant 0 : i32
    return %c0_i32, %c0_i32_0 : i32, i32
  }
  func.func @transform_3(%arg0: i32, %arg1: i32) -> (i32, i32) {
    %c0_i32 = arith.constant 0 : i32
    %c0_i32_0 = arith.constant 0 : i32
    %c0_i32_1 = arith.constant 0 : i32
    return %c0_i32, %c0_i32_0 : i32, i32
  }
  func.func @transform_4(%arg0: i32, %arg1: i32) -> (i32, i32, i32) {
    %c0_i32 = arith.constant 0 : i32
    %c0_i32_0 = arith.constant 0 : i32
    return %arg0, %c0_i32, %arg1 : i32, i32, i32
  }
  func.func @transform_5(%arg0: i32, %arg1: i32) -> (i32, i32, i32) {
    %c1_i32 = arith.constant 1 : i32
    %0 = arith.muli %arg0, %c1_i32 : i32
    %1 = arith.addi %0, %arg1 : i32
    %c0_i32 = arith.constant 0 : i32
    %c0_i32_0 = arith.constant 0 : i32
    %c0_i32_1 = arith.constant 0 : i32
    return %1, %c0_i32, %c0_i32_0 : i32, i32, i32
  }
}

</mosaic_0001>

<bundles_post_ra>
// kernel: tpu_custom_call.1
= control target key start
LH: loop header
LB: loop body
LE: loop exit
PB: predicated region body
PF: predicated region fallthrough
CT: control target
= control target key end

     0   :  { %11 = vsyncpa [#allocation3], 0  ;;  %s2288_s0 = inlined_call_operand.vmem [shape: f32[2,16,16], index: 0, kind: input, shape index: {}]   ;;  %s2289_s1 = inlined_call_operand.vmem [shape: f32[128,16], index: 1, kind: input, shape index: {}]   ;;  %s2290_s2 = inlined_call_operand.vmem [shape: f32[16,128], index: 2, kind: input, shape index: {}]   ;;  %s2291_s3 = inlined_call_operand.vmem [shape: f32[128,1], index: 3, kind: input, shape index: {}]   ;;  %s2292_s4 = inlined_call_operand.hbm [shape: f32[2,16,16], index: 4, kind: output, shape index: {0}]   ;;  %s2293_s5 = inlined_call_operand.hbm [shape: f32[2,2,128], index: 5, kind: output, shape index: {1}]  }
   0x1   :  { %13 = vsyncpa [#allocation3 + $0x1], 0 }
   0x2   :  { %14 = vsyncpa [#allocation5], 0 }
   0x3   :  { %16 = vsyncpa [#allocation5 + $0x1], 0  ;;  %s1663_s18 = smov 0   ;;  %s1665_s19 = smov 0  }
   0x4   :  { %s1667_s20 = smov 0   ;;  %s1669_s21 = smov 0  }
   0x5   :  { %s1671_s22 = smov 0   ;;  %s1673_s23 = smov 0  }
   0x6 LB: > { %s1139_s24 = sadd.s32 4294967295, %s1621_s23   ;;  %s1140_s25 = sadd.s32 4294967294, %s1621_s23   ;;  %s1621_s23 = sphi %s1673_s23, %s22_s23   ;;  %s1617_s22 = sphi %s1671_s22, %s2302_s22   ;;  %s1613_s21 = sphi %s1669_s21, %s2301_s21   ;;  %s1609_s20 = sphi %s1667_s20, %s2300_s20   ;;  %s1605_s19 = sphi %s1665_s19, %s2299_s19   ;;  %s1601_s18 = sphi %s1663_s18, %s2298_s18  }
   0x7   : > { %s34_s26 = sadd.s32 1, %s1617_s22  ;;  %s134_s27 = sadd.s32 1, %s1609_s20 }
   0x8   : > { %p36_p0 = scmp.ge.s32.totalorder %s34_s26, 2  ;;  %p144_p1 = scmp.ne.s32.totalorder %s1609_s20, %s1605_s19 }
   0x9   : > { %p145_p2 = scmp.eq.s32.totalorder %s1139_s24, 1  ;;  %p150_p3 = scmp.ne.s32.totalorder %s1605_s19, %s1601_s18 }
   0xa   : > { %s2304_s26 = smov (%p36_p0, %s34_s26), 0  ;;  %p151_p5 = scmp.eq.s32.totalorder %s1140_s25, 1 }
   0xb   : > { %p1703_p4 = por %p145_p2, %p144_p1  ;;  %s129_s29 = ssub.s32 %s1617_s22, %s2304_s26 }
   0xc   : > { %p1143_p6 = scmp.ge.s32.totalorder %s1621_s23, 1  ;;  %p132_p7 = scmp.eq.s32.totalorder %s129_s29, 0 }
   0xd   : > { %p1710_p8 = por %p151_p5, %p150_p3  ;;  %p217_p9 = scmp.lt.s32.totalorder %s1621_s23, 3 }
   0xe   : > { %s1716_s6 = scalar_select %p132_p7, %s1609_s20, %s134_s27  }
   0xf   : > { %p218_p10 = pnand %p1143_p6, %p217_p9 }
  0x10   : > { %p253_p11 = scmp.lt.s32.totalorder (!%p218_p10), %s1613_s21, 1  ;;  %v264_v0 = vld [vmem:[%s2289_s1] sm:$0xff] (!%p218_p10)  ;;  %vm298_vm0 = vcmask (!%p218_p10), 130048   ;;  %v1623_v1 = vmov (!%p218_p10), 0   ;;  %v284_v2 = vld [vmem:[%s2291_s3 + $0x10] sm:$0xff] (!%p218_p10)  ;;  %v285_v7 = vld [vmem:[%s2291_s3 + $0x18] sm:$0xff] (!%p218_p10) }
  0x11   : > { %221 = sbr.rel (%p218_p10) target bundleno = 755 (0x2f3), region = 36  ;;  %1279 = vmatprep.mubr.msk.f32.mxu1 (!%p218_p10), %vm298_vm0, %v264_v0  ;;  %1510 = vset.pattern.permute.xlu1 (!%p218_p10), %v1623_v1  ;;  %v282_v3 = vld [vmem:[%s2291_s3] sm:$0xff] (!%p218_p10)  ;;  %v283_v8 = vld [vmem:[%s2291_s3 + $0x8] sm:$0xff] (!%p218_p10)  ;;  %v266_v10 = vld [vmem:[%s2289_s1 + $0x10] sm:$0xff] (!%p218_p10)  ;;  %v1624_v36 = vmov (!%p218_p10), 0.0|0.0   ;;  %vm1625_vm1 = vmmov (!%p218_p10), 0  }
  0x12   : > { %1509 = vset.pattern.permute.xlu0 (!%p218_p10), %v1623_v1  ;;  %504 = vperm.xlu1 (!%p218_p10), %1510, %v284_v2   ;;  %v265_v9 = vld [vmem:[%s2289_s1 + $0x8] sm:$0xff] (!%p218_p10)  ;;  %v286_v12 = vld [vmem:[%s2291_s3 + $0x20] sm:$0xff] (!%p218_p10)  ;;  %v267_v13 = vld [vmem:[%s2289_s1 + $0x18] sm:$0xff] (!%p218_p10)  ;;  %s2189_s27 = sand.u32 (!%p218_p10), 1, %s1605_s19   ;;  %s1221_s11 = sshll.u32 (!%p218_p10), %s1613_s21, 8 }
  0x13   : > { %494 = vperm.xlu0 (!%p218_p10), %1509, %v282_v3   ;;  %v287_v11 = vld [vmem:[%s2291_s3 + $0x28] sm:$0xff] (!%p218_p10)  ;;  %v268_v14 = vld [vmem:[%s2289_s1 + $0x20] sm:$0xff] (!%p218_p10)  ;;  %v289_v15 = vld [vmem:[%s2291_s3 + $0x38] sm:$0xff] (!%p218_p10)  ;;  %1409 = vmatprep.subr.bf16.mxu0 (!%p218_p10), %v1624_v36  ;;  %s1144_s29 = sshll.u32 (!%p218_p10), %s2189_s27, 4  ;;  %s2208_s14 = scalar_lea.hbm (!%p218_p10), %s2292_s4, %s1221_s11 }
  0x14   : > { %v288_v16 = vld [vmem:[%s2291_s3 + $0x30] sm:$0xff] (!%p218_p10)  ;;  %v269_v17 = vld [vmem:[%s2289_s1 + $0x28] sm:$0xff] (!%p218_p10)  ;;  %v290_v20 = vld [vmem:[%s2291_s3 + $0x40] sm:$0xff] (!%p218_p10)  ;;  %s245_s7 = scalar_lea.vmem (!%p218_p10), [#allocation2], %s1144_s29  ;;  %s995_s15 = scalar_lea.sflag (!%p218_p10), [#allocation3], %s2189_s27 }
  0x15   : > { %v270_v18 = vld [vmem:[%s2289_s1 + $0x30] sm:$0xff] (!%p218_p10)  ;;  %v291_v19 = vld [vmem:[%s2291_s3 + $0x48] sm:$0xff] (!%p218_p10)  ;;  %v271_v21 = vld [vmem:[%s2289_s1 + $0x38] sm:$0xff] (!%p218_p10)  ;;  %s1014_s8 = sshll.u32 (!%p218_p10), %s245_s7, 4  ;;  %s1629_s17 = smov (!%p218_p10), [#allocation2]   ;;  %s2199_s8 = int_to_ptr.vmem [resolvable:$true] %s1014_s8 }
  0x16   : > { %509 = vperm.xlu1 (!%p218_p10), %1510, %v285_v7   ;;  %v272_v22 = vld [vmem:[%s2289_s1 + $0x40] sm:$0xff] (!%p218_p10)  ;;  %v293_v23 = vld [vmem:[%s2291_s3 + $0x58] sm:$0xff] (!%p218_p10)  ;;  %v292_v24 = vld [vmem:[%s2291_s3 + $0x50] sm:$0xff] (!%p218_p10)  ;;  %s1511_s16 = scalar_lea.vmem (!%p218_p10), %s2199_s8, 256  ;;  %s1515_s24 = sshll.u32 (!%p218_p10), %s1629_s17, 4  ;;  %s1516_s24 = int_to_ptr.vmem [resolvable:$false] %s1515_s24 }
  0x17   : > { %499 = vperm.xlu0 (!%p218_p10), %1509, %v283_v8   ;;  %v273_v25 = vld [vmem:[%s2289_s1 + $0x48] sm:$0xff] (!%p218_p10)  ;;  %v274_v26 = vld [vmem:[%s2289_s1 + $0x50] sm:$0xff] (!%p218_p10)  ;;  %v294_v28 = vld [vmem:[%s2291_s3 + $0x60] sm:$0xff] (!%p218_p10)  ;;  %p1512_p12 = scmp.ne.s32.totalorder (!%p218_p10), %s2199_s8, %s1511_s16  ;;  %s1517_s25 = scalar_lea.vmem (!%p218_p10), %s1516_s24, 512 }
  0x18   : > { %s254_s9 = scalar_select %p253_p11, %s1613_s21, 1  ;;  %v295_v27 = vld [vmem:[%s2291_s3 + $0x68] sm:$0xff]  ;;  %v275_v29 = vld [vmem:[%s2289_s1 + $0x58] sm:$0xff]  ;;  %v276_v30 = vld [vmem:[%s2289_s1 + $0x60] sm:$0xff] }
  0x19   : > { %v297_v31 = vld [vmem:[%s2291_s3 + $0x78] sm:$0xff]  ;;  %v296_v32 = vld [vmem:[%s2291_s3 + $0x70] sm:$0xff]  ;;  %v277_v33 = vld [vmem:[%s2289_s1 + $0x68] sm:$0xff]  ;;  %p1513_p13 = pnand %p1512_p12, %p1703_p4  ;;  %p1518_p1 = scmp.lt.s32.totalorder %s2199_s8, %s1516_s24 }
  0x1a   : > { %s1220_s10 = sshll.u32 %s254_s9, 4  ;;  %519 = vperm.xlu1 %1510, %v287_v11   ;;  %v278_v34 = vld [vmem:[%s2289_s1 + $0x70] sm:$0xff]  ;;  %v279_v35 = vld [vmem:[%s2289_s1 + $0x78] sm:$0xff]  ;;  %v280_v39 = vld [vmem:[%s2290_s2] sm:$0xff]  ;;  %s1145_s9 = sshll.u32 %s2189_s27, 1 }
  0x1b   : > { %s260_s13 = scalar_lea.vmem %s2288_s0, %s1220_s10  ;;  %514 = vperm.xlu0 %1509, %v286_v12   ;;  %s2201_s10 = scalar_lea.vmem [#allocation4], %s1145_s9 }
  0x1c   : > { %v1733_v4 = vld [vmem:[%s260_s13] sm:$0xff]  ;;  %v1735_v5 = vld [vmem:[%s260_s13 + $0x8] sm:$0xff]  ;;  %p1514_p0 = pneg %p1513_p13  ;;  %p1519_p2 = scmp.lt.s32.totalorder %s1517_s25, %s1511_s16 }
  0x1d   : > { %v1373_v6 = vpack.c.bf16 %v1735_v5, %v1733_v4 }
  0x1e   : > { %529 = vperm.xlu1 %1510, %v289_v15   ;;  %p1520_p3 = por %p1519_p2, %p1518_p1 }
  0x1f   : > { %1374 = vmatprep.subr.bf16.mxu1 %v1373_v6  ;;  %524 = vperm.xlu0 %1509, %v288_v16  }
  0x20   : > { %1376 = vmatpush3.bf16.msra.mxu1 %v1373_v6  ;;  %p1521_p5 = pnand %p1520_p3, %p1514_p0 }
  0x22   : > { %539 = vperm.xlu1 %1510, %v291_v19  }
  0x23   : > { %1280 = vmatmul.mubr.msk.f32.vlgmr.msra.gmra.mrb[0].mxu1 %vm298_vm0, %v265_v9  ;;  %534 = vperm.xlu0 %1509, %v290_v20  }
  0x24   : > { %1282 = vmatprep.mubr.msk.f32.mxu1 %vm298_vm0, %v266_v10 }
  0x26   : > { %549 = vperm.xlu1 %1510, %v293_v23  }
  0x27   : > { %1283 = vmatmul.mubr.msk.f32.gmra.mrb[2].mxu1 %vm298_vm0, %v267_v13  ;;  %544 = vperm.xlu0 %1509, %v292_v24  }
  0x28   : > { %1285 = vmatprep.mubr.msk.f32.mxu1 %vm298_vm0, %v268_v14 }
  0x2a   : > { %559 = vperm.xlu1 %1510, %v295_v27   ;;  %v1626_v27 = vmov 0.0  }
  0x2b   : > { %1286 = vmatmul.mubr.msk.f32.gmra.mrb[4].mxu1 %vm298_vm0, %v269_v17  ;;  %554 = vperm.xlu0 %1509, %v294_v28  }
  0x2c   : > { %1288 = vmatprep.mubr.msk.f32.mxu1 %vm298_vm0, %v270_v18  ;;  %1370 = vmatprep.mubr.msk.f32.mxu0 %vm1625_vm1, %v1626_v27 }
  0x2e   : > { %569 = vperm.xlu1 %1510, %v297_v31  }
  0x2f   : > { %1289 = vmatmul.mubr.msk.f32.gmra.mrb[6].mxu1 %vm298_vm0, %v271_v21  ;;  %564 = vperm.xlu0 %1509, %v296_v32  }
  0x30   : > { %1291 = vmatprep.mubr.msk.f32.mxu1 %vm298_vm0, %v272_v22 }
  0x33   : > { %1292 = vmatmul.mubr.msk.f32.gmra.mrb[8].mxu1 %vm298_vm0, %v273_v25 }
  0x34   : > { %1294 = vmatprep.mubr.msk.f32.mxu1 %vm298_vm0, %v274_v26 }
  0x37   : > { %1295 = vmatmul.mubr.msk.f32.gmra.mrb[10].mxu1 %vm298_vm0, %v275_v29 }
  0x38   : > { %1297 = vmatprep.mubr.msk.f32.mxu1 %vm298_vm0, %v276_v30 }
  0x3b   : > { %1298 = vmatmul.mubr.msk.f32.gmra.mrb[12].mxu1 %vm298_vm0, %v277_v33 }
  0x3c   : > { %1300 = vmatprep.mubr.msk.f32.mxu1 %vm298_vm0, %v278_v34 }
  0x3f   : > { %1301 = vmatmul.mubr.msk.f32.gmra.mrb[14].mxu1 %vm298_vm0, %v279_v35 }
  0x40   : > { %1335 = vmatprep.mubr.f32.mxu1 %v280_v39 }
  0x91   : > { %v505_v37 = vpop.permute.xlu1 %504 }
  0x92   : > { %v495_v38 = vpop.permute.xlu0 %494 }
  0x95   : > { %v510_v40 = vpop.permute.xlu1 %509 }
  0x96   : > { %v500_v41 = vpop.permute.xlu0 %499 }
  0x99   : > { %v520_v42 = vpop.permute.xlu1 %519 }
  0x9a   : > { %v515_v43 = vpop.permute.xlu0 %514 }
  0x9d   : > { %v530_v46 = vpop.permute.xlu1 %529 }
  0x9e   : > { %v525_v48 = vpop.permute.xlu0 %524 }
  0xa1   : > { %v540_v55 = vpop.permute.xlu1 %539 }
  0xa2   : > { %v535_v57 = vpop.permute.xlu0 %534 }
  0xa5   : > { %v550_v10 = vpop.permute.xlu1 %549 }
  0xa6   : > { %v545_v15 = vpop.permute.xlu0 %544 }
  0xa9   : > { %v560_v28 = vpop.permute.xlu1 %559 }
  0xaa   : > { %v555_v30 = vpop.permute.xlu0 %554 }
  0xf6   : > { %v1281_v44 = vpop.f32.mrb[0].mxu1 }
  0xf7   : > { %v413_v45 = vpop.f32.mrb[1].mxu1  ;;  %v1845_v50 = vsub.f32 %v500_v41, %v1281_v44  ;;  %v570_v41 = vpop.permute.xlu1 %569 }
  0xf8   : > { %v1847_v51 = vsub.f32 %v495_v38, %v413_v45  ;;  %v565_v45 = vpop.permute.xlu0 %564 }
  0xf9   : > { %v606_v58 = vsel %vm298_vm0, %v1845_v50, inf }
  0xfa   : > { %v1284_v47 = vpop.f32.mrb[2].mxu1  ;;  %v605_v61 = vsel %vm298_vm0, %v1847_v51, inf }
  0xfb   : > { %v423_v49 = vpop.f32.mrb[3].mxu1  ;;  %v1855_v59 = vsub.f32 %v510_v40, %v1284_v47 }
  0xfc   : > { %v1861_v62 = vsub.f32 %v505_v37, %v423_v49 }
  0xfd   : > { %v608_v8 = vsel %vm298_vm0, %v1855_v59, inf }
  0xfe   : > { %v1287_v52 = vpop.f32.mrb[4].mxu1  ;;  %v607_v11 = vsel %vm298_vm0, %v1861_v62, inf }
  0xff   : > { %v1849_v53 = vsub.f32 %v520_v42, %v1287_v52  ;;  %v433_v54 = vpop.f32.mrb[5].mxu1 }
 0x100   : > { %v1851_v56 = vsub.f32 %v515_v43, %v433_v54 }
 0x101   : > { %v611_v60 = vsel %vm298_vm0, %v1849_v53, inf }
 0x102   : > { %v612_v63 = vmin.f32 %v606_v58, %v611_v60  ;;  %v609_v0 = vsel %vm298_vm0, %v1851_v56, inf  ;;  %v1290_v1 = vpop.f32.mrb[6].mxu1 }
 0x103   : > { %v610_v2 = vmin.f32 %v605_v61, %v609_v0  ;;  %v1865_v3 = vsub.f32 %v530_v46, %v1290_v1  ;;  %v443_v6 = vpop.f32.mrb[7].mxu1 }
 0x104   : > { %v1867_v7 = vsub.f32 %v525_v48, %v443_v6 }
 0x105   : > { %v615_v9 = vsel %vm298_vm0, %v1865_v3, inf }
 0x106   : > { %v616_v12 = vmin.f32 %v608_v8, %v615_v9  ;;  %v613_v13 = vsel %vm298_vm0, %v1867_v7, inf  ;;  %v1293_v14 = vpop.f32.mrb[8].mxu1 }
 0x107   : > { %v614_v16 = vmin.f32 %v607_v11, %v613_v13  ;;  %v1877_v17 = vsub.f32 %v540_v55, %v1293_v14  ;;  %v453_v18 = vpop.f32.mrb[9].mxu1 }
 0x108   : > { %v1879_v19 = vsub.f32 %v535_v57, %v453_v18 }
 0x109   : > { %v619_v20 = vsel %vm298_vm0, %v1877_v17, inf }
 0x10a   : > { %v620_v21 = vmin.f32 %v612_v63, %v619_v20  ;;  %v617_v22 = vsel %vm298_vm0, %v1879_v19, inf  ;;  %v1296_v23 = vpop.f32.mrb[10].mxu1  ;;  %v588_v63 = vlaneseq }
 0x10b   : > { %v618_v24 = vmin.f32 %v610_v2, %v617_v22  ;;  %v1885_v25 = vsub.f32 %v550_v10, %v1296_v23  ;;  %v463_v26 = vpop.f32.mrb[11].mxu1 }
 0x10c   : > { %v1888_v29 = vsub.f32 %v545_v15, %v463_v26  ;;  %v1904_v2 = vshrl.u32 %v588_v63, 7 }
 0x10d   : > { %v623_v31 = vsel %vm298_vm0, %v1885_v25, inf }
 0x10e   : > { %v624_v32 = vmin.f32 %v616_v12, %v623_v31  ;;  %v621_v33 = vsel %vm298_vm0, %v1888_v29, inf  ;;  %v1299_v34 = vpop.f32.mrb[12].mxu1  ;;  %v1907_v9 = vadd.s32 16, %v1904_v2  ;;  %v1910_v10 = vadd.s32 24, %v1904_v2 }
 0x10f   : > { %v622_v35 = vmin.f32 %v614_v16, %v621_v33  ;;  %v1894_v37 = vsub.f32 %v560_v28, %v1299_v34  ;;  %v473_v38 = vpop.f32.mrb[13].mxu1  ;;  %v1913_v11 = vadd.s32 48, %v1904_v2  ;;  %v1916_v12 = vadd.s32 56, %v1904_v2 }
 0x110   : > { %v1896_v39 = vsub.f32 %v555_v30, %v473_v38  ;;  %v1919_v14 = vadd.s32 80, %v1904_v2  ;;  %v1922_v15 = vadd.s32 88, %v1904_v2  ;;  %v1925_v16 = vadd.s32 112, %v1904_v2 }
 0x111   : > { %v627_v40 = vsel %vm298_vm0, %v1894_v37, inf  ;;  %v1928_v18 = vadd.s32 120, %v1904_v2  ;;  %v1936_v22 = vadd.s32 32, %v1904_v2  ;;  %v1939_v23 = vadd.s32 40, %v1904_v2 }
 0x112   : > { %v628_v42 = vmin.f32 %v620_v21, %v627_v40  ;;  %v625_v43 = vsel %vm298_vm0, %v1896_v39, inf  ;;  %v1302_v44 = vpop.f32.mrb[14].mxu1  ;;  %v1933_v21 = vadd.s32 8, %v1904_v2  ;;  %v1945_v26 = vadd.s32 72, %v1904_v2 }
 0x113   : > { %v626_v46 = vmin.f32 %v618_v24, %v625_v43  ;;  %v587_v47 = vsub.f32 %v570_v41, %v1302_v44  ;;  %v483_v48 = vpop.f32.mrb[15].mxu1  ;;  %v1942_v24 = vadd.s32 64, %v1904_v2  ;;  %v1948_v28 = vadd.s32 96, %v1904_v2 }
 0x114   : > { %v586_v49 = vsub.f32 %v565_v45, %v483_v48  ;;  %v1951_v30 = vadd.s32 104, %v1904_v2 }
 0x115   : > { %v633_v52 = vmin.f32 %v626_v46, %v628_v42  ;;  %v631_v54 = vsel %vm298_vm0, %v587_v47, inf }
 0x116   : > { %v632_v55 = vmin.f32 %v624_v32, %v631_v54  ;;  %v629_v57 = vsel %vm298_vm0, %v586_v49, inf }
 0x117   : > { %v630_v58 = vmin.f32 %v622_v35, %v629_v57 }
 0x119   : > { %v634_v60 = vmin.f32 %v630_v58, %v632_v55 }
 0x11b   : > { %v635_v61 = vmin.f32 %v633_v52, %v634_v60 }
 0x11d   : > { %v636_v0 = vrot.slane %v635_v61, 4 }
 0x11f   : > { %v637_v1 = vmin.f32 %v635_v61, %v636_v0 }
 0x121   : > { %v638_v6 = vrot.slane %v637_v1, 2 }
 0x123   : > { %v639_v8 = vmin.f32 %v637_v1, %v638_v6 }
 0x125   : > { %v640_v13 = vrot.slane %v639_v8, 1 }
 0x127   : > { %v1930_v20 = vmin.f32 %v639_v8, %v640_v13 }
 0x129   : > { %vm644_vm2 = vcmp.eq.f32.partialorder %v1861_v62, %v1930_v20  ;;  %vm645_vm3 = vcmp.eq.f32.partialorder %v1855_v59, %v1930_v20  ;;  %vm648_vm4 = vcmp.eq.f32.partialorder %v1867_v7, %v1930_v20  ;;  %vm649_vm5 = vcmp.eq.f32.partialorder %v1865_v3, %v1930_v20 }
 0x12a   : > { %vm652_vm6 = vcmp.eq.f32.partialorder %v1888_v29, %v1930_v20  ;;  %vm653_vm7 = vcmp.eq.f32.partialorder %v1885_v25, %v1930_v20  ;;  %vm656_vm8 = vcmp.eq.f32.partialorder %v586_v49, %v1930_v20  ;;  %vm657_vm9 = vcmp.eq.f32.partialorder %v587_v47, %v1930_v20 }
 0x12b   : > { %v660_v62 = vsel %vm644_vm2, %v1907_v9, 128  ;;  %v661_v59 = vsel %vm645_vm3, %v1910_v10, 128  ;;  %v664_v31 = vsel %vm648_vm4, %v1913_v11, 128  ;;  %v665_v7 = vsel %vm649_vm5, %v1916_v12, 128 }
 0x12c   : > { %v668_v3 = vsel %vm652_vm6, %v1919_v14, 128  ;;  %v669_v32 = vsel %vm653_vm7, %v1922_v15, 128  ;;  %v672_v29 = vsel %vm656_vm8, %v1925_v16, 128  ;;  %v673_v25 = vsel %vm657_vm9, %v1928_v18, 128 }
 0x12d   : > { %v676_v33 = vsel %vm298_vm0, %v660_v62, 2147483647  ;;  %v677_v34 = vsel %vm298_vm0, %v661_v59, 2147483647  ;;  %v684_v35 = vsel %vm298_vm0, %v664_v31, 2147483647  ;;  %vm642_vm10 = vcmp.eq.f32.partialorder %v1847_v51, %v1930_v20 }
 0x12e   : > { %vm685_vm11 = vcmp.lt.s32.totalorder %v676_v33, %v684_v35  ;;  %v687_v38 = vsel %vm298_vm0, %v665_v7, 2147483647  ;;  %v696_v40 = vsel %vm298_vm0, %v668_v3, 2147483647  ;;  %v699_v41 = vsel %vm298_vm0, %v669_v32, 2147483647 }
 0x12f   : > { %v686_v42 = vsel %vm685_vm11, %v676_v33, %v684_v35  ;;  %vm688_vm12 = vcmp.lt.s32.totalorder %v677_v34, %v687_v38  ;;  %v708_v43 = vsel %vm298_vm0, %v672_v29, 2147483647  ;;  %v711_v44 = vsel %vm298_vm0, %v673_v25, 2147483647 }
 0x130   : > { %v689_v45 = vsel %vm688_vm12, %v677_v34, %v687_v38  ;;  %vm697_vm13 = vcmp.lt.s32.totalorder %v686_v42, %v696_v40  ;;  %vm643_vm14 = vcmp.eq.f32.partialorder %v1845_v50, %v1930_v20  ;;  %vm646_vm15 = vcmp.eq.f32.partialorder %v1851_v56, %v1930_v20 }
 0x131   : > { %v698_v46 = vsel %vm697_vm13, %v686_v42, %v696_v40  ;;  %vm700_vm1 = vcmp.lt.s32.totalorder %v689_v45, %v699_v41  ;;  %vm647_vm2 = vcmp.eq.f32.partialorder %v1849_v53, %v1930_v20  ;;  %vm650_vm3 = vcmp.eq.f32.partialorder %v1879_v19, %v1930_v20 }
 0x132   : > { %v701_v47 = vsel %vm700_vm1, %v689_v45, %v699_v41  ;;  %vm709_vm4 = vcmp.lt.s32.totalorder %v698_v46, %v708_v43  ;;  %vm651_vm5 = vcmp.eq.f32.partialorder %v1877_v17, %v1930_v20  ;;  %vm654_vm6 = vcmp.eq.f32.partialorder %v1896_v39, %v1930_v20  ;;  %v281_v45 = vld [vmem:[%s2290_s2 + $0x8] sm:$0xff] }
 0x133   : > { %v710_v50 = vsel %vm709_vm4, %v698_v46, %v708_v43  ;;  %vm712_vm7 = vcmp.lt.s32.totalorder %v701_v47, %v711_v44  ;;  %vm655_vm8 = vcmp.eq.f32.partialorder %v1894_v37, %v1930_v20  ;;  %v658_v53 = vsel %vm642_vm10, %v1904_v2, 128 }
 0x134   : > { %v713_v56 = vsel %vm712_vm7, %v701_v47, %v711_v44  ;;  %v659_v19 = vsel %vm643_vm14, %v1933_v21, 128  ;;  %v662_v48 = vsel %vm646_vm15, %v1936_v22, 128  ;;  %v663_v17 = vsel %vm647_vm2, %v1939_v23, 128 }
 0x135   : > { %vm716_vm9 = vcmp.lt.s32.totalorder %v710_v50, %v713_v56  ;;  %v666_v49 = vsel %vm650_vm3, %v1942_v24, 128  ;;  %v667_v54 = vsel %vm651_vm5, %v1945_v26, 128  ;;  %v674_v37 = vsel %vm298_vm0, %v658_v53, 2147483647 }
 0x136   : > { %v717_v52 = vsel %vm716_vm9, %v710_v50, %v713_v56  ;;  %v675_v55 = vsel %vm298_vm0, %v659_v19, 2147483647  ;;  %v678_v51 = vsel %vm298_vm0, %v662_v48, 2147483647  ;;  %v681_v57 = vsel %vm298_vm0, %v663_v17, 2147483647 }
 0x137   : > { %v670_v58 = vsel %vm654_vm6, %v1948_v28, 128  ;;  %v671_v60 = vsel %vm655_vm8, %v1951_v30, 128  ;;  %vm679_vm10 = vcmp.lt.s32.totalorder %v674_v37, %v678_v51  ;;  %vm682_vm11 = vcmp.lt.s32.totalorder %v675_v55, %v681_v57 }
 0x138   : > { %v680_v61 = vsel %vm679_vm10, %v674_v37, %v678_v51  ;;  %v683_v63 = vsel %vm682_vm11, %v675_v55, %v681_v57  ;;  %v690_v0 = vsel %vm298_vm0, %v666_v49, 2147483647  ;;  %v693_v1 = vsel %vm298_vm0, %v667_v54, 2147483647  ;;  %vm2033_vm10 = vmpackc.low %vm298_vm0, %vm298_vm0 }
 0x139   : > { %vm691_vm12 = vcmp.lt.s32.totalorder %v680_v61, %v690_v0  ;;  %vm694_vm13 = vcmp.lt.s32.totalorder %v683_v63, %v693_v1  ;;  %v702_v13 = vsel %vm298_vm0, %v670_v58, 2147483647  ;;  %v705_v62 = vsel %vm298_vm0, %v671_v60, 2147483647 }
 0x13a   : > { %v692_v6 = vsel %vm691_vm12, %v680_v61, %v690_v0  ;;  %v695_v8 = vsel %vm694_vm13, %v683_v63, %v693_v1  ;;  %v1627_v38 = vmov 1.0|1.0  }
 0x13b   : > { %vm703_vm14 = vcmp.lt.s32.totalorder %v692_v6, %v702_v13  ;;  %vm706_vm15 = vcmp.lt.s32.totalorder %v695_v8, %v705_v62 }
 0x13c   : > { %v704_v39 = vsel %vm703_vm14, %v692_v6, %v702_v13  ;;  %v707_v20 = vsel %vm706_vm15, %v695_v8, %v705_v62 }
 0x13d   : > { %vm714_vm1 = vcmp.lt.s32.totalorder %v704_v39, %v707_v20 }
 0x13e   : > { %v715_v59 = vsel %vm714_vm1, %v704_v39, %v707_v20 }
 0x13f   : > { %vm718_vm2 = vcmp.lt.s32.totalorder %v715_v59, %v717_v52 }
 0x140   : > { %v719_v31 = vsel %vm718_vm2, %v715_v59, %v717_v52 }
 0x141   : > { %v720_v7 = vrot.slane %v719_v31, 4 }
 0x143   : > { %vm721_vm3 = vcmp.lt.s32.totalorder %v719_v31, %v720_v7 }
 0x144   : > { %v722_v3 = vsel %vm721_vm3, %v719_v31, %v720_v7 }
 0x145   : > { %v723_v32 = vrot.slane %v722_v3, 2 }
 0x147   : > { %vm724_vm4 = vcmp.lt.s32.totalorder %v722_v3, %v723_v32 }
 0x148   : > { %v725_v29 = vsel %vm724_vm4, %v722_v3, %v723_v32 }
 0x149   : > { %v726_v25 = vrot.slane %v725_v29, 1 }
 0x14b   : > { %vm727_vm5 = vcmp.lt.s32.totalorder %v725_v29, %v726_v25 }
 0x14c   : > { %v2021_v33 = vsel %vm727_vm5, %v725_v29, %v726_v25 }
 0x14d   : > { %vm729_vm6 = vcmp.eq.s32.totalorder %v1904_v2, %v2021_v33  ;;  %vm730_vm7 = vcmp.eq.s32.totalorder %v1933_v21, %v2021_v33  ;;  %vm731_vm8 = vcmp.eq.s32.totalorder %v1907_v9, %v2021_v33  ;;  %vm732_vm9 = vcmp.eq.s32.totalorder %v1910_v10, %v2021_v33 }
 0x14e   : > { %vm1377_vm11 = vmpackc.low %vm730_vm7, %vm729_vm6  ;;  %v1164_v35 = vsel %vm729_vm6, 1.0, %v1626_v27  ;;  %v1165_v2 = vsel %vm730_vm7, 1.0, %v1626_v27  ;;  %vm733_vm13 = vcmp.eq.s32.totalorder %v1936_v22, %v2021_v33  ;;  %vm734_vm14 = vcmp.eq.s32.totalorder %v1939_v23, %v2021_v33 }
 0x14f   : > { %1378 = vmatprep.subr.msk.bf16.mxu1 %vm1377_vm11, %v1627_v38  ;;  %v1410_v21 = vpack.c.bf16 %v1165_v2, %v1164_v35  ;;  %vm1381_vm12 = vmpackc.low %vm732_vm9, %vm731_vm8  ;;  %v1166_v40 = vsel %vm731_vm8, 1.0, %v1626_v27  ;;  %v1167_v41 = vsel %vm732_vm9, 1.0, %v1626_v27  ;;  %vm735_vm1 = vcmp.eq.s32.totalorder %v1913_v11, %v2021_v33 }
 0x150   : > { %1380 = vmatpush3.bf16.msk.msra.mxu1 %vm1377_vm11, %v1627_v38  ;;  %vm1385_vm15 = vmpackc.low %vm734_vm14, %vm733_vm13  ;;  %vm736_vm2 = vcmp.eq.s32.totalorder %v1916_v12, %v2021_v33  ;;  %v1414_v9 = vpack.c.bf16 %v1167_v41, %v1166_v40  ;;  %vm737_vm4 = vcmp.eq.s32.totalorder %v1942_v24, %v2021_v33  ;;  %vm738_vm5 = vcmp.eq.s32.totalorder %v1945_v26, %v2021_v33 }
 0x151   : > { %1382 = vmatprep.subr.msk.bf16.mxu1 %vm1381_vm12, %v1627_v38  ;;  %1412 = vmatpush3.bf16.xpose.msk.msra.mxu0 %vm2033_vm10, %v1410_v21  ;;  %vm1389_vm3 = vmpackc.low %vm736_vm2, %vm735_vm1  ;;  %v1168_v10 = vsel %vm733_vm13, 1.0, %v1626_v27  ;;  %v1169_v42 = vsel %vm734_vm14, 1.0, %v1626_v27  ;;  %vm739_vm7 = vcmp.eq.s32.totalorder %v1919_v14, %v2021_v33  ;;  %vm740_vm8 = vcmp.eq.s32.totalorder %v1922_v15, %v2021_v33 }
 0x152   : > { %1413 = vmatprep.subr.bf16.mxu0 %v1624_v36  ;;  %vm1393_vm6 = vmpackc.low %vm738_vm5, %vm737_vm4  ;;  %v1418_v22 = vpack.c.bf16 %v1169_v42, %v1168_v10  ;;  %vm741_vm11 = vcmp.eq.s32.totalorder %v1948_v28, %v2021_v33  ;;  %v1170_v23 = vsel %vm735_vm1, 1.0, %v1626_v27  ;;  %v1171_v43 = vsel %vm736_vm2, 1.0, %v1626_v27 }
 0x153   : > { %vm1397_vm9 = vmpackc.low %vm740_vm8, %vm739_vm7  ;;  %vm743_vm14 = vcmp.eq.s32.totalorder %v1925_v16, %v2021_v33  ;;  %v1422_v11 = vpack.c.bf16 %v1171_v43, %v1170_v23  ;;  %v1172_v12 = vsel %vm737_vm4, 1.0, %v1626_v27  ;;  %v1173_v44 = vsel %vm738_vm5, 1.0, %v1626_v27 }
 0x154   : > { %1384 = vmatpush3.bf16.msk.msra.mxu1 %vm1381_vm12, %v1627_v38  ;;  %vm742_vm12 = vcmp.eq.s32.totalorder %v1951_v30, %v2021_v33  ;;  %v1426_v46 = vpack.c.bf16 %v1173_v44, %v1172_v12  ;;  %v1174_v24 = vsel %vm739_vm7, 1.0, %v1626_v27  ;;  %v1175_v26 = vsel %vm740_vm8, 1.0, %v1626_v27 }
 0x155   : > { %1386 = vmatprep.subr.msk.bf16.mxu1 %vm1385_vm15, %v1627_v38  ;;  %vm1401_vm13 = vmpackc.low %vm742_vm12, %vm741_vm11  ;;  %v1430_v47 = vpack.c.bf16 %v1175_v26, %v1174_v24  ;;  %v1176_v50 = vsel %vm741_vm11, 1.0, %v1626_v27  ;;  %v1177_v14 = vsel %vm742_vm12, 1.0, %v1626_v27  ;;  %v1178_v15 = vsel %vm743_vm14, 1.0, %v1626_v27 }
 0x156   : > { %v1434_v53 = vpack.c.bf16 %v1177_v14, %v1176_v50  ;;  %v1628_v30 = vmov 1.0  }
 0x158   : > { %1388 = vmatpush3.bf16.msk.msra.mxu1 %vm1385_vm15, %v1627_v38  ;;  %vm744_vm15 = vcmp.eq.s32.totalorder %v1928_v18, %v2021_v33 }
 0x159   : > { %1390 = vmatprep.subr.msk.bf16.mxu1 %vm1389_vm3, %v1627_v38  ;;  %1416 = vmatpush3.bf16.xpose.msk.msra.mxu0 %vm2033_vm10, %v1414_v9  ;;  %vm1405_vm1 = vmpackc.low %vm744_vm15, %vm743_vm14  ;;  %v1179_v28 = vsel %vm744_vm15, 1.0, %v1626_v27 }
 0x15a   : > { %1417 = vmatprep.subr.bf16.mxu0 %v1624_v36  ;;  %v1438_v56 = vpack.c.bf16 %v1179_v28, %v1178_v15 }
 0x15c   : > { %1392 = vmatpush3.bf16.msk.msra.mxu1 %vm1389_vm3, %v1627_v38 }
 0x15d   : > { %1394 = vmatprep.subr.msk.bf16.mxu1 %vm1393_vm6, %v1627_v38 }
 0x160   : > { %1396 = vmatpush3.bf16.msk.msra.mxu1 %vm1393_vm6, %v1627_v38 }
 0x161   : > { %1398 = vmatprep.subr.msk.bf16.mxu1 %vm1397_vm9, %v1627_v38  ;;  %1420 = vmatpush3.bf16.xpose.msk.msra.mxu0 %vm2033_vm10, %v1418_v22 }
 0x162   : > { %1421 = vmatprep.subr.bf16.mxu0 %v1624_v36 }
 0x164   : > { %1400 = vmatpush3.bf16.msk.msra.mxu1 %vm1397_vm9, %v1627_v38 }
 0x165   : > { %1402 = vmatprep.subr.msk.bf16.mxu1 %vm1401_vm13, %v1627_v38 }
 0x168   : > { %1404 = vmatpush3.bf16.msk.msra.mxu1 %vm1401_vm13, %v1627_v38 }
 0x169   : > { %1406 = vmatprep.subr.msk.bf16.mxu1 %vm1405_vm1, %v1627_v38  ;;  %1424 = vmatpush3.bf16.xpose.msk.msra.mxu0 %vm2033_vm10, %v1422_v11 }
 0x16a   : > { %1425 = vmatprep.subr.bf16.mxu0 %v1624_v36 }
 0x16c   : > { %1408 = vmatpush3.bf16.msk.msra.mxu1 %vm1405_vm1, %v1627_v38 }
 0x16f   : > { %1336 = vmatmul.mubr.f32.vlgmr.msra.gmra.mrb[16].mxu1 %v281_v45 }
 0x171   : > { %1428 = vmatpush3.bf16.xpose.msk.msra.mxu0 %vm2033_vm10, %v1426_v46 }
 0x172   : > { %1429 = vmatprep.subr.bf16.mxu0 %v1624_v36 }
 0x179   : > { %1432 = vmatpush3.bf16.xpose.msk.msra.mxu0 %vm2033_vm10, %v1430_v47 }
 0x17a   : > { %1433 = vmatprep.subr.bf16.mxu0 %v1624_v36 }
 0x181   : > { %1436 = vmatpush3.bf16.xpose.msk.msra.mxu0 %vm2033_vm10, %v1434_v53 }
 0x182   : > { %1437 = vmatprep.subr.bf16.mxu0 %v1624_v36 }
 0x189   : > { %1440 = vmatpush3.bf16.xpose.msk.msra.mxu0 %vm2033_vm10, %v1438_v56 }
 0x190   : > { %1371 = vmatmul.mubr.msk.f32.vlgmr.msra.gmra.mrb[0].mxu0 %vm298_vm0, %v1628_v30 }
 0x242   : > { %v1337_v36 = vpop.f32.mrb[16].mxu1 }
 0x243   : > { %853 = vst.msk [vmem:[%s245_s7 + $0x8] sm:$0xff] %vm298_vm0, %v1337_v36  ;;  %v976_v16 = vsub.f32 %v1735_v5, %v1337_v36  ;;  %v843_v18 = vpop.f32.mrb[17].mxu1 }
 0x244   : > { %852 = vst.msk [vmem:[%s245_s7] sm:$0xff] %vm298_vm0, %v843_v18  ;;  %v975_v27 = vsub.f32 %v1733_v4, %v843_v18 }
 0x245   : > { %v978_v19 = vmul.f32 %v976_v16, %v976_v16 }
 0x246   : > { %v977_v48 = vmul.f32 %v975_v27, %v975_v27 }
 0x247   : > { %v982_v17 = vsel %vm298_vm0, %v978_v19, 0.0 }
 0x248   : > { %983 = vadd.xlane.f32.xlu1 %v982_v17  ;;  %v979_v49 = vsel %vm298_vm0, %v977_v48, 0.0 }
 0x249   : > { %980 = vadd.xlane.f32.xlu0 %v979_v49 }
 0x263   : > { %v971_v52 = vpop.f32.mrb[0].mxu0 }
 0x264   : > { %v1372_v5 = vpop.f32.mrb[1].mxu0  ;;  %992 = vst [vmem:[%s2201_s10] sm:$0x1] %v971_v52 }
 0x265   : > { %1524 = shalt.err (!%p1521_p5)
}
 0x266   : > { %s1525_s29 = scalar_lea.hbm %s2208_s14, 256  ;;  %s1529_s11 = scalar_lea.hbm %s2292_s4, 512 }
 0x267   : > { %p1526_p6 = scmp.ne.s32.totalorder %s2208_s14, %s1525_s29  ;;  %p1530_p10 = scmp.lt.u32.totalorder %s2208_s14, %s2292_s4 }
 0x268   : > { %p1531_p11 = scmp.lt.u32.totalorder %s1529_s11, %s1525_s29  ;;  %p1533_p13 = scmp.lt.u32.totalorder %s1525_s29, %s2208_s14 }
 0x269   : > { %p1527_p7 = pnand %p1526_p6, %p1703_p4 }
 0x26a   : > { %p1532_p12 = por %p1531_p11, %p1530_p10 }
 0x26b   : > { %p1528_p9 = pneg %p1527_p7 }
 0x26c   : > { %p1534_p0 = por %p1533_p13, %p1532_p12 }
 0x26e   : > { %p1535_p1 = pnand %p1534_p0, %p1528_p9 }
 0x270   : > { %1538 = shalt.err (!%p1535_p1)
}
 0x271   : > { %s1630_s16 = smov 128   ;;  %s1631_s17 = smov 8  }
 0x272   : > { %1441 = dma.vmem_to_hbm [thread:$0]  (%p1703_p4), %s2199_s8, 256, %s2208_s14, %s995_s15, %s1630_s16, %s1630_s16, %s1631_s17  }
 0x273   : > { %s1031_s24 = sshll.u32 %s2201_s10, 4  ;;  %s1217_s25 = sshll.u32 %s1613_s21, 5  ;;  %s2236_s24 = int_to_ptr.vmem [resolvable:$true] %s1031_s24 }
 0x274   : > { %s2241_s8 = scalar_lea.hbm %s2293_s5, %s1217_s25  ;;  %s1000_s14 = scalar_lea.sflag [#allocation5], %s2189_s27 }
 0x275   : > { %s1539_s15 = scalar_lea.vmem %s2236_s24, 32  ;;  %s1632_s21 = smov [#allocation4]  }
 0x276   : > { %p1540_p2 = scmp.ne.s32.totalorder %s2236_s24, %s1539_s15  ;;  %s1543_s9 = sshll.u32 %s1632_s21, 4  ;;  %s1544_s9 = int_to_ptr.vmem [resolvable:$false] %s1543_s9 }
 0x277   : > { %s1545_s11 = scalar_lea.vmem %s1544_s9, 64  ;;  %p1546_p6 = scmp.lt.s32.totalorder %s2236_s24, %s1544_s9 }
 0x278   : > { %p1541_p3 = pnand %p1540_p2, %p1703_p4  ;;  %p1547_p7 = scmp.lt.s32.totalorder %s1545_s11, %s1539_s15 }
 0x27a   : > { %p1542_p5 = pneg %p1541_p3  ;;  %p1548_p9 = por %p1547_p7, %p1546_p6 }
 0x27c   : > { %p1549_p10 = pnand %p1548_p9, %p1542_p5 }
 0x2d5   : > { %v984_v4 = vpop.xlane.xlu1 %983 }
 0x2d6   : > { %v981_v54 = vpop.xlane.xlu0 %980 }
 0x2d7   : > { %v985_v37 = vadd.f32 %v984_v4, %v981_v54 }
 0x2d9   : > { %v986_v55 = vrot.slane %v985_v37, 4 }
 0x2db   : > { %v987_v51 = vadd.f32 %v986_v55, %v985_v37 }
 0x2dd   : > { %v988_v57 = vrot.slane %v987_v51, 2 }
 0x2df   : > { %v989_v58 = vadd.f32 %v988_v57, %v987_v51 }
 0x2e1   : > { %v990_v60 = vrot.slane %v989_v58, 1 }
 0x2e3   : > { %v991_v61 = vadd.f32 %v990_v60, %v989_v58 }
 0x2e5   : > { %993 = vst [vmem:[%s2201_s10 + $0x1] sm:$0x1] %v991_v61 }
 0x2e6   : > { %1552 = shalt.err (!%p1549_p10)
}
 0x2e7   : > { %s1553_s27 = scalar_lea.hbm %s2241_s8, 32  ;;  %s1557_s13 = scalar_lea.hbm %s2293_s5, 64 }
 0x2e8   : > { %p1554_p11 = scmp.ne.s32.totalorder %s2241_s8, %s1553_s27  ;;  %p1558_p0 = scmp.lt.u32.totalorder %s2241_s8, %s2293_s5 }
 0x2e9   : > { %p1559_p1 = scmp.lt.u32.totalorder %s1557_s13, %s1553_s27  ;;  %p1561_p3 = scmp.lt.u32.totalorder %s1553_s27, %s2241_s8 }
 0x2ea   : > { %p1555_p12 = pnand %p1554_p11, %p1703_p4 }
 0x2eb   : > { %p1560_p2 = por %p1559_p1, %p1558_p0 }
 0x2ec   : > { %p1556_p13 = pneg %p1555_p12 }
 0x2ed   : > { %p1562_p5 = por %p1561_p3, %p1560_p2 }
 0x2ef   : > { %p1563_p6 = pnand %p1562_p5, %p1556_p13 }
 0x2f1   : > { %1566 = shalt.err (!%p1563_p6)
}
 0x2f2   : > { %1442 = dma.vmem_to_hbm [thread:$0]  (%p1703_p4), %s2236_s24, 32, %s2241_s8, %s1000_s14  }
 0x2f3 PF: > { %p1452_p7 = scmp.ge.s32.totalorder %s1621_s23, 2  ;;  %s1043_s25 = sand.u32 1, %s1601_s18  }
 0x2f4   : > { %s1044_s29 = scalar_lea.sflag [#allocation3], %s1043_s25 }
 0x2f5   : > { %p1446_p9 = pnand %p1452_p7, %p1710_p8 }
 0x2f7   : > { %1592 = dma.done.wait (!%p1446_p9), %s1044_s29, 256  }
 0x2f8   : > { %1594 = vsyncadd (!%p1446_p9), %s1044_s29, 4294967040  ;;  %s1053_s7 = scalar_lea.sflag [#allocation5], %s1043_s25 }
 0x2f9   : > { %1596 = dma.done.wait (!%p1446_p9), %s1053_s7, 32  }
 0x2fa   : > { %1598 = vsyncadd (!%p1446_p9), %s1053_s7, 4294967264  ;;  %s22_s23 = sadd.s32 1, %s1621_s23   ;;  %s2298_s18 = smov %s1605_s19 }
 0x2fb   : > { %p19_p10 = scmp.ge.s32.totalorder %s22_s23, 4   ;;  %s2299_s19 = smov %s1609_s20 }
 0x2fc   : > { %s2300_s20 = smov %s1716_s6  ;;  %s2301_s21 = smov %s1617_s22 }
 0x2fd   : > { %s2302_s22 = smov %s2304_s26  ;;  %21 = sbr.rel (!%p19_p10) target bundleno = 6 (0x6), region = 88 }
 0x304   :  { %1058 = vsyncpa [#allocation3], 1 }
 0x305   :  { %1060 = vsyncpa [#allocation3 + $0x1], 1 }
 0x306   :  { %1061 = vsyncpa [#allocation5], 1 }
 0x307   :  { %1063 = vsyncpa [#allocation5 + $0x1], 1 }

</bundles_post_ra>
